<compile_context>
chip_gen: v6e
topology: v6e:2x2x1
jax: 0.10.0
libtpu: 0.0.40
codegen_flags: <defaults>
</compile_context>

<pallas_src>
import jax
import jax.numpy as jnp
from jax import lax
from jax.experimental import pallas as pl
from jax.experimental.pallas import tpu as pltpu


def _round_up(v, m):
    return ((v + m - 1) // m) * m


def _num_tensorcores():
    """Best-effort TensorCores-per-chip (2 on v7x, 1 on v5e/v6e)."""
    try:
        info = pltpu.get_tpu_info()
        for attr in ("num_cores", "core_count", "tensorcore_count"):
            v = getattr(info, attr, None)
            if isinstance(v, int) and v > 0:
                return v
    except Exception:
        pass
    try:
        v = getattr(jax.devices()[0], "num_cores", None)
        if isinstance(v, int) and v > 0:
            return v
    except Exception:
        pass
    return 1


def _vmem_capacity_bytes():
    try:
        v = getattr(pltpu.get_tpu_info(), "vmem_capacity_bytes", None)
        if isinstance(v, int) and v > 0:
            return v
    except Exception:
        pass
    return 64 * 1024 * 1024  # conservative default: v7x per-core VMEM


def _unit_fused_kernel(x_ref, w_ref, b_ref, o_ref):
    # x_ref: (bb, K); w_ref: (bn, K) in PyTorch (out, in) layout; b_ref: (1, bn).
    y = lax.dot_general(
        x_ref[...], w_ref[...],
        dimension_numbers=(((1,), (1,)), ((), ())),
        preferred_element_type=jnp.float32,
    )
    o_ref[...] = jnp.tanh(y + b_ref[...]).astype(o_ref.dtype)


def _unit_tiled_kernel(x_ref, w_ref, b_ref, o_ref):
    # grid = (m, n, k); o_ref block index ignores k -> resident f32 accumulator.
    k = pl.program_id(2)

    @pl.when(k == 0)
    def _init():
        # Initialize the accumulator with the (broadcast) bias; drops the add
        # from the epilogue.
        o_ref[...] = jnp.broadcast_to(b_ref[...], o_ref.shape).astype(o_ref.dtype)

    o_ref[...] += lax.dot_general(
        x_ref[...], w_ref[...],
        dimension_numbers=(((1,), (1,)), ((), ())),
        preferred_element_type=jnp.float32,
    ).astype(o_ref.dtype)

    @pl.when(k == pl.num_programs(2) - 1)
    def _finalize():
        o_ref[...] = jnp.tanh(o_ref[...].astype(jnp.float32)).astype(o_ref.dtype)


def unit_forward(x, w, b, *, block_b=None, block_n=None, block_k=None,
                 force_tiled=False):
    """tanh(x @ w.T + b)  (PyTorch `Unit.forward`) via Pallas TPU kernels.

    x: (B, in_N) f32
    w: (out_N, in_N) f32   (PyTorch nn.Linear weight layout, kept as-is)
    b: (out_N,) f32
    """
    B, in_N = x.shape
    out_N, in_N_w = w.shape
    assert in_N == in_N_w, "weight/in features mismatch"
    out_dtype = x.dtype
    b2d = b.reshape(1, out_N)

    itemsize = jnp.dtype(x.dtype).itemsize
    n_cores = _num_tensorcores()
    vmem_cap = _vmem_capacity_bytes()
    vmem_budget = int(0.5 * vmem_cap)
    vmem_limit = int(0.7 * vmem_cap)

    # -------------------- fast path: full W resident in VMEM --------------------
    if not force_tiled:
        bb = block_b
        if bb is None:
            if B <= 1024:
                bb = B
            else:
                bb = _round_up(pl.cdiv(B, pl.cdiv(B, 1024)), 8)
        bb = min(bb, B)
        bn = out_N
        nb_tiles = 1
        mb_tiles = pl.cdiv(B, bb)

        # Only split a "parallel" axis when there are >= 2 TensorCores (v7x).
        if n_cores >= 2 and mb_tiles < 2 and block_b is None:
            if B >= 16:
                bb = _round_up(pl.cdiv(B, 2), 8)
            elif out_N >= 256 and out_N % 256 == 0:
                nb_tiles = 2
                bn = out_N // 2

        Bp = _round_up(B, bb)
        mb_tiles = Bp // bb

        # Conservative VMEM estimate (count every operand double-buffered).
        est_fast = 2 * itemsize * (bn * in_N + bb * in_N + bb * bn + bn)

        if est_fast <= vmem_budget:
            x_p = x if Bp == B else jnp.pad(x, ((0, Bp - B), (0, 0)))
            out = pl.pallas_call(
                _unit_fused_kernel,
                out_shape=jax.ShapeDtypeStruct((Bp, out_N), out_dtype),
                grid=(mb_tiles, nb_tiles),
                in_specs=[
                    pl.BlockSpec((bb, in_N), lambda i, j: (i, 0)),
                    pl.BlockSpec((bn, in_N), lambda i, j: (j, 0)),
                    pl.BlockSpec((1, bn), lambda i, j: (0, j)),
                ],
                out_specs=pl.BlockSpec((bb, bn), lambda i, j: (i, j)),
                compiler_params=pltpu.CompilerParams(
                    dimension_semantics=("parallel", "parallel"),
                    vmem_limit_bytes=vmem_limit,
                ),
            )(x_p, w, b2d)
            return out if Bp == B else out[:B]

    # ------------- fallback: (M, N, K)-tiled, resident-output accumulator -------------
    bk = block_k if block_k is not None else min(1024, _round_up(in_N, 128))
    bn = block_n if block_n is not None else min(512, _round_up(out_N, 128))
    bb = block_b if block_b is not None else min(1024, _round_up(B, 8))

    Bp = _round_up(B, bb)
    Kp = _round_up(in_N, bk)
    Np = _round_up(out_N, bn)

    x_p = x if (Bp == B and Kp == in_N) else jnp.pad(x, ((0, Bp - B), (0, Kp - in_N)))
    # Padding W here is a per-call HBM pass, but this path only triggers when the
    # layer is too big to keep W resident in VMEM (or when forced for testing).
    w_p = w if (Np == out_N and Kp == in_N) else jnp.pad(
        w, ((0, Np - out_N), (0, Kp - in_N)))
    b_p = b2d if Np == out_N else jnp.pad(b2d, ((0, 0), (0, Np - out_N)))

    grid = (Bp // bb, Np // bn, Kp // bk)

    out = pl.pallas_call(
        _unit_tiled_kernel,
        out_shape=jax.ShapeDtypeStruct((Bp, Np), jnp.float32),
        grid=grid,
        in_specs=[
            pl.BlockSpec((bb, bk), lambda i, j, k: (i, k)),
            pl.BlockSpec((bn, bk), lambda i, j, k: (j, k)),
            pl.BlockSpec((1, bn), lambda i, j, k: (0, j)),
        ],
        out_specs=pl.BlockSpec((bb, bn), lambda i, j, k: (i, j)),
        compiler_params=pltpu.CompilerParams(
            dimension_semantics=("parallel", "parallel", "arbitrary"),
            vmem_limit_bytes=vmem_limit,
        ),
    )(x_p, w_p, b_p)

    out = out[:B, :out_N]
    return out.astype(out_dtype) if out.dtype != out_dtype else out


if __name__ == "__main__":
    key = jax.random.PRNGKey(0)
    kx, kw, kb, kx2, kw2, kb2 = jax.random.split(key, 6)

    # --- small shapes consistent with the module: Unit(32, 32), batch=8 ---
    B, in_N, out_N = 8, 32, 32
    x = jax.random.normal(kx, (B, in_N), dtype=jnp.float32)
    w = jax.random.normal(kw, (out_N, in_N), dtype=jnp.float32) * 0.1
    b = jax.random.normal(kb, (out_N,), dtype=jnp.float32) * 0.1

    out = jax.block_until_ready(unit_forward(x, w, b))
    ref = jnp.tanh(x @ w.T + b)
    assert jnp.allclose(out, ref, atol=1e-5, rtol=1e-5), "fast-path mismatch"

    # --- exercise the large-layer fallback (K-tiled, resident-output acc) ---
    B2, in_N2, out_N2 = 256, 512, 384
    x2 = jax.random.normal(kx2, (B2, in_N2), dtype=jnp.float32)
    w2 = jax.random.normal(kw2, (out_N2, in_N2), dtype=jnp.float32) * 0.05
    b2 = jax.random.normal(kb2, (out_N2,), dtype=jnp.float32) * 0.1

    out2 = jax.block_until_ready(
        unit_forward(x2, w2, b2, force_tiled=True, block_k=128)
    )
    ref2 = jnp.tanh(x2 @ w2.T + b2)
    assert jnp.allclose(out2, ref2, atol=1e-4, rtol=1e-4), "tiled-path mismatch"

    print("KERNEL_OK")
</pallas_src>

<mosaic_0001>
module attributes {stable_mosaic.version = 11 : i64} {
  func.func @_unit_fused_kernel(%arg0: i32, %arg1: i32, %arg2: memref<8x32xf32, #tpu.memory_space<vmem>>, %arg3: memref<32x32xf32, #tpu.memory_space<vmem>>, %arg4: memref<1x32xf32, #tpu.memory_space<vmem>>, %arg5: memref<8x32xf32, #tpu.memory_space<vmem>>) attributes {dimension_semantics = [#tpu.dimension_semantics<parallel>, #tpu.dimension_semantics<parallel>], iteration_bounds = array<i64: 1, 1>, scalar_prefetch = 0 : i64, scratch_operands = 0 : i64, tpu.core_type = #tpu.core_type<tc>, window_params = [{transform_indices = @transform_0, window_bounds = array<i64: 8, 32>}, {transform_indices = @transform_1, window_bounds = array<i64: 32, 32>}, {transform_indices = @transform_2, window_bounds = array<i64: 1, 32>}, {transform_indices = @transform_3, window_bounds = array<i64: 8, 32>}]} {
    %c0 = arith.constant 0 : index
    %c0_0 = arith.constant 0 : index
    %0 = vector.load %arg2[%c0, %c0_0] : memref<8x32xf32, #tpu.memory_space<vmem>>, vector<8x32xf32>
    %c0_1 = arith.constant 0 : index
    %c0_2 = arith.constant 0 : index
    %1 = vector.load %arg3[%c0_1, %c0_2] : memref<32x32xf32, #tpu.memory_space<vmem>>, vector<32x32xf32>
    %cst = arith.constant dense<0.000000e+00> : vector<8x32xf32>
    %2 = tpu.matmul %0, %1, %cst {dimension_numbers = #tpu.dot_dimension_numbers<[1], [1], [0], [0], [0, 0, 1, 0], [], []>} : vector<8x32xf32>, vector<32x32xf32>, vector<8x32xf32> -> vector<8x32xf32>
    %c0_3 = arith.constant 0 : index
    %c0_4 = arith.constant 0 : index
    %3 = vector.load %arg4[%c0_3, %c0_4] : memref<1x32xf32, #tpu.memory_space<vmem>>, vector<1x32xf32>
    %4 = vector.broadcast %3 : vector<1x32xf32> to vector<8x32xf32>
    %5 = arith.addf %2, %4 : vector<8x32xf32>
    %6 = math.tanh %5 : vector<8x32xf32>
    %c0_5 = arith.constant 0 : index
    %c0_6 = arith.constant 0 : index
    %7 = vector.load %arg5[%c0_5, %c0_6] : memref<8x32xf32, #tpu.memory_space<vmem>>, vector<8x32xf32>
    tpu.vector_store %arg5[%c0_5, %c0_6], %6 {strides = array<i32>} : memref<8x32xf32, #tpu.memory_space<vmem>>, vector<8x32xf32>,
    return
  }
  func.func @transform_0(%arg0: i32, %arg1: i32) -> (i32, i32) {
    %c0_i32 = arith.constant 0 : i32
    %c0_i32_0 = arith.constant 0 : i32
    return %arg0, %c0_i32 : i32, i32
  }
  func.func @transform_1(%arg0: i32, %arg1: i32) -> (i32, i32) {
    %c0_i32 = arith.constant 0 : i32
    %c0_i32_0 = arith.constant 0 : i32
    return %arg1, %c0_i32 : i32, i32
  }
  func.func @transform_2(%arg0: i32, %arg1: i32) -> (i32, i32) {
    %c0_i32 = arith.constant 0 : i32
    %c0_i32_0 = arith.constant 0 : i32
    return %c0_i32, %arg1 : i32, i32
  }
  func.func @transform_3(%arg0: i32, %arg1: i32) -> (i32, i32) {
    %c0_i32 = arith.constant 0 : i32
    return %arg0, %arg1 : i32, i32
  }
}

</mosaic_0001>

<bundles_post_ra>
// kernel: tpu_custom_call.1
= control target key start
LH: loop header
LB: loop body
LE: loop exit
PB: predicated region body
PF: predicated region fallthrough
CT: control target
= control target key end

     0   :  { %8 = vsyncpa [#allocation3], 0  ;;  %s299_s0 = inlined_call_operand.hbm [shape: f32[8,32], index: 0, kind: input, shape index: {}]   ;;  %s300_s1 = inlined_call_operand.hbm [shape: f32[32,32], index: 1, kind: input, shape index: {}]   ;;  %s301_s2 = inlined_call_operand.vmem [shape: f32[1,32], index: 2, kind: input, shape index: {}]   ;;  %s302_s3 = inlined_call_operand.hbm [shape: f32[8,32], index: 3, kind: output, shape index: {}]  }
   0x1   :  { %9 = vsyncpa [#allocation6], 0 }
   0x2   :  { %10 = vsyncpa [#allocation4], 0  ;;  %s254_s12 = smov [#allocation2]   ;;  %s255_s14 = smov [#allocation5]  }
   0x3   :  { %s17_s13 = sshll.u32 %s254_s12, 4  ;;  %s26_s15 = sshll.u32 %s255_s14, 4  ;;  %s18_s13 = int_to_ptr.vmem [resolvable:$true] %s17_s13  ;;  %s27_s15 = int_to_ptr.vmem [resolvable:$true] %s26_s15 }
   0x4   :  { %s196_s16 = scalar_lea.vmem %s18_s13, 128  ;;  %p201_p1 = scmp.lt.s32.totalorder %s18_s13, %s18_s13 }
   0x5   :  { %p197_p0 = scmp.ne.s32.totalorder %s18_s13, %s196_s16  ;;  %p202_p2 = scmp.lt.s32.totalorder %s196_s16, %s196_s16 }
   0x7   :  { %p203_p3 = por %p202_p2, %p201_p1 }
   0x9   :  { %p204_p4 = pnand %p203_p3, %p197_p0 }
   0xb   :  { %207 = shalt.err (!%p204_p4)
}
   0xc   :  { %20 = dma.hbm_to_vmem [thread:$0]  %s299_s0, 128, %s18_s13, [#allocation3]  }
   0xd   :  { %s216_s19 = scalar_lea.vmem %s27_s15, 512  ;;  %p221_p6 = scmp.lt.s32.totalorder %s27_s15, %s27_s15 }
   0xe   :  { %p217_p5 = scmp.ne.s32.totalorder %s27_s15, %s216_s19  ;;  %p222_p7 = scmp.lt.s32.totalorder %s216_s19, %s216_s19 }
  0x10   :  { %p223_p8 = por %p222_p7, %p221_p6 }
  0x12   :  { %p224_p9 = pnand %p223_p8, %p217_p5 }
  0x14   :  { %227 = shalt.err (!%p224_p9)
}
  0x15   :  { %s256_s20 = smov 128   ;;  %s257_s21 = smov 8  }
  0x16   :  { %32 = dma.hbm_to_vmem [thread:$0]  %s300_s1, 512, %s27_s15, [#allocation6], %s256_s20, %s256_s20, %s257_s21  }
  0x17   :  { %248 = dma.done.wait [#allocation3], 128  }
  0x18   :  { %249 = vsyncadd [#allocation3], 4294967168 }
  0x19   :  { %250 = dma.done.wait [#allocation6], 512  }
  0x1a   :  { %251 = vsyncadd [#allocation6], 4294966784  ;;  %v258_v0 = vmov 0.0   ;;  %vm259_vm0 = vmmov 0   ;;  %vm53_vm1 = vcmask 261120   ;;  %v45_v1 = vld [vmem:[#allocation5 + $0x18] sm:$0xff] }
  0x1b   :  { %168 = vmatprep.subr.mxu0 %v258_v0  ;;  %176 = vmatprep.mubr.msk.f32.mxu0 %vm259_vm0, %v258_v0  ;;  %v44_v2 = vld [vmem:[#allocation5 + $0x10] sm:$0xff]  ;;  %v43_v3 = vld [vmem:[#allocation5 + $0x8] sm:$0xff]  ;;  %v42_v4 = vld [vmem:[#allocation5] sm:$0xff]  ;;  %s260_s24 = smov [#allocation7]  }
  0x1c   :  { %169 = vmatpush3.xpose.msk.msra.mxu0 %vm53_vm1, %v45_v1  ;;  %v41_v5 = vld [vmem:[#allocation2] sm:$0xff]  ;;  %s147_s25 = sshll.u32 %s260_s24, 4  ;;  %s148_s25 = int_to_ptr.vmem [resolvable:$true] %s147_s25 }
  0x1d   :  { %170 = vmatprep.subr.mxu0 %v258_v0  ;;  %v157_v6 = vld [vmem:[%s301_s2] ss:$0 sm:$0xff]  ;;  %s228_s26 = scalar_lea.vmem %s148_s25, 128  ;;  %p233_p11 = scmp.lt.s32.totalorder %s148_s25, %s148_s25 }
  0x1e   :  { %p229_p10 = scmp.ne.s32.totalorder %s148_s25, %s228_s26  ;;  %p234_p12 = scmp.lt.s32.totalorder %s228_s26, %s228_s26 }
  0x20   :  { %171 = vmatpush3.xpose.msk.msra.mxu0 %vm53_vm1, %v44_v2  ;;  %p235_p13 = por %p234_p12, %p233_p11 }
  0x21   :  { %172 = vmatprep.subr.mxu0 %v258_v0 }
  0x22   :  { %p236_p0 = pnand %p235_p13, %p229_p10 }
  0x24   :  { %173 = vmatpush3.xpose.msk.msra.mxu0 %vm53_vm1, %v43_v3 }
  0x25   :  { %174 = vmatprep.subr.mxu0 %v258_v0 }
  0x28   :  { %175 = vmatpush3.xpose.msk.msra.mxu0 %vm53_vm1, %v42_v4 }
  0x2b   :  { %177 = vmatmul.mubr.msk.f32.vlgmr.msra.gmra.mxu0 %vm53_vm1, %v41_v5 }
  0xeb   :  { %v135_v7 = vpop.f32.mrf.mxu0 }
  0xec   :  { %v136_v8 = vadd.f32 %v157_v6, %v135_v7 }
  0xed   :  { %v178_v9 = vpop.f32.mrf.mxu0 }
  0xee   :  { %186 = vtanh.f32 %v136_v8 }
  0xfb   :  { %v187_v10 = vpop.eup %186 }
  0xfc   :  { %140 = vst.msk [vmem:[#allocation7] sm:$0xff] %vm53_vm1, %v187_v10 }
  0xfd   :  { %239 = shalt.err (!%p236_p0)
}
  0xfe   :  { %150 = dma.vmem_to_hbm [thread:$0]  %s148_s25, 128, %s302_s3, [#allocation4]  }
  0xff   :  { %252 = dma.done.wait [#allocation4], 128  }
 0x100   :  { %253 = vsyncadd [#allocation4], 4294967168 }
 0x101   :  { %154 = vsyncpa [#allocation3], 1 }
 0x102   :  { %155 = vsyncpa [#allocation6], 1 }
 0x103   :  { %156 = vsyncpa [#allocation4], 1 }

</bundles_post_ra>
